<compile_context>
chip_gen: v7x
topology: tpu7x:2x2x1
jax: 0.10.0
libtpu: 0.0.40
codegen_flags: <defaults>
</compile_context>

<pallas_src>
import jax
import jax.numpy as jnp
from jax.experimental import pallas as pl
from jax.experimental.pallas import tpu as pltpu


# --------------------------------------------------------------------------- kernels


def _sa_kernel_planes(x_ref, w_ref, b_ref, o_ref):
    # x_ref / o_ref : (b_blk, C, s_blk, 128) VMEM, native dtype
    # w_ref         : (1, C) SMEM f32 conv weights (out_channels == 1)
    # b_ref         : (1, 1) SMEM f32 conv bias
    bb, c_dim, sb, lanes = x_ref.shape
    pre = jnp.full((bb, sb, lanes), b_ref[0, 0], dtype=jnp.float32)
    for c in range(c_dim):  # statically unrolled; this path only runs for small C
        pre = pre + x_ref[:, c].astype(jnp.float32) * w_ref[0, c]
    att = jax.nn.sigmoid(pre).astype(o_ref.dtype)          # (bb, sb, 128)
    for c in range(c_dim):                                  # modulate in native dtype
        o_ref[:, c] = x_ref[:, c] * att


def _sa_kernel_mxu(x_ref, w_ref, b_ref, o_ref):
    # x_ref / o_ref : (b_blk, C, T) VMEM, native dtype
    # w_ref         : (1, C) VMEM f32 ;  b_ref : (1, 1) SMEM f32
    bias = b_ref[0, 0]
    w = w_ref[...]                                          # (1, C) f32
    for i in range(x_ref.shape[0]):                         # b_blk is small, static unroll
        xi = x_ref[i]                                       # (C, T)
        pre = jnp.dot(w.astype(xi.dtype), xi,
                      preferred_element_type=jnp.float32,
                      precision=jax.lax.Precision.HIGHEST) + bias   # (1, T) f32
        att = jax.nn.sigmoid(pre).astype(xi.dtype)          # (1, T)
        o_ref[i] = xi * att                                 # sublane-broadcast multiply


# --------------------------------------------------------------------- block planning


def _round_down(x, m):
    return (x // m) * m


def _vmem_budget():
    """Generation-aware (vmem_limit_bytes, per-block byte budget)."""
    cap = 64 * 1024 * 1024                      # conservative default (v7x physical)
    try:
        info = pltpu.get_tpu_info()
        cap = int(getattr(info, "vmem_capacity_bytes", cap)) or cap
    except Exception:
        pass
    vmem_limit = min((cap * 3) // 4, 100 * 1024 * 1024)   # v6e/v5e ~96 MiB, v7x ~48 MiB
    vmem_limit = max(vmem_limit, 32 * 1024 * 1024)
    # 2 double-buffered input blocks + 2 output blocks + f32 intermediates -> ~1/6 each.
    return vmem_limit, vmem_limit // 6


def _plan_blocks_4d(B, C, S, itemsize, block_budget):
    """(b_blk, s_blk) for the (B, C, S, 128) plane layout."""
    budget_elems = max(block_budget // itemsize, C * 128)
    per_batch = C * S * 128
    if per_batch >= budget_elems:
        b_blk = 1
        s_cap = max(1, budget_elems // (C * 128))
        s_blk = S if s_cap >= S else min(S, max(8, _round_down(s_cap, 8)))
    else:
        s_blk = S
        b_blk = max(1, min(B, budget_elems // per_batch))
    # keep >= 2 grid steps so both TensorCores (v7x megacore) get work
    if pl.cdiv(B, b_blk) * pl.cdiv(S, s_blk) < 2:
        if b_blk > 1:
            b_blk = pl.cdiv(b_blk, 2)
        elif s_blk > 8 and S > 8:
            s_blk = max(8, _round_down(pl.cdiv(s_blk, 2), 8))
    return b_blk, s_blk


def _plan_blocks_3d(B, C, HW, itemsize, block_budget, max_b_blk=32):
    """(b_blk, t_hw) for the (B, C, HW) layout (MXU path)."""
    budget_elems = max(block_budget // itemsize, C * 128)
    hw_cap = max(1, budget_elems // C)
    if hw_cap >= HW:
        t_hw = HW                                           # full spatial extent
        b_blk = max(1, min(B, max_b_blk, budget_elems // (C * HW)))
    else:
        b_blk = 1
        t_hw = max(128, _round_down(hw_cap, 128))
    if pl.cdiv(B, b_blk) * pl.cdiv(HW, t_hw) < 2:
        if b_blk > 1:
            b_blk = pl.cdiv(b_blk, 2)
        elif t_hw > 256 and HW > 256:
            t_hw = max(128, _round_down(pl.cdiv(t_hw, 2), 128))
    return b_blk, t_hw


# --------------------------------------------------------------------------- wrapper


def spatial_attention(x_nchw, weight, bias, *, small_c_threshold=8):
    """x_nchw: (B, C, H, W); weight: (1, C, 1, 1); bias: (1,). Matches PyTorch forward."""
    B, C, H, W = x_nchw.shape
    HW = H * W
    dtype = x_nchw.dtype
    itemsize = jnp.dtype(dtype).itemsize

    vmem_limit, block_budget = _vmem_budget()
    w_f32 = weight.reshape(1, C).astype(jnp.float32)
    b_f32 = bias.reshape(1, 1).astype(jnp.float32)

    cost = pl.CostEstimate(
        flops=3 * B * C * HW,                 # channel reduction + broadcast modulate
        transcendentals=B * HW,               # sigmoid
        bytes_accessed=2 * B * C * HW * itemsize,
    )
    params = pltpu.CompilerParams(
        dimension_semantics=("parallel", "parallel"),
        vmem_limit_bytes=vmem_limit,
    )

    if C < small_c_threshold and HW % 128 == 0:
        # ---- Path A: (B, C, S, 128) plane layout, SMEM scalar weights -----------
        S = HW // 128
        x4 = x_nchw.reshape(B, C, S, 128)
        b_blk, s_blk = _plan_blocks_4d(B, C, S, itemsize, block_budget)
        grid = (pl.cdiv(B, b_blk), pl.cdiv(S, s_blk))
        out = pl.pallas_call(
            _sa_kernel_planes,
            out_shape=jax.ShapeDtypeStruct((B, C, S, 128), dtype),
            grid_spec=pltpu.PrefetchScalarGridSpec(
                num_scalar_prefetch=0,
                grid=grid,
                in_specs=[
                    pl.BlockSpec((b_blk, C, s_blk, 128), lambda bi, si: (bi, 0, si, 0)),
                    pl.BlockSpec((1, C), lambda bi, si: (0, 0),
                                 memory_space=pltpu.MemorySpace.SMEM),
                    pl.BlockSpec((1, 1), lambda bi, si: (0, 0),
                                 memory_space=pltpu.MemorySpace.SMEM),
                ],
                out_specs=pl.BlockSpec((b_blk, C, s_blk, 128),
                                       lambda bi, si: (bi, 0, si, 0)),
            ),
            compiler_params=params,
            cost_estimate=cost,
        )(x4, w_f32, b_f32)
        return out.reshape(B, C, H, W)

    # ---- Path B: (B, C, HW) layout, MXU channel reduction -----------------------
    # Ragged HW is handled by the cdiv grid (Pallas masks the edge block); no pad/slice.
    # TODO(synk): for C < 8 with HW % 128 != 0 this leaves dead sublanes in the (C, T)
    # vreg tiles; an in-kernel masked-edge store on the plane layout would fix it.
    x3 = x_nchw.reshape(B, C, HW)
    b_blk, t_hw = _plan_blocks_3d(B, C, HW, itemsize, block_budget)
    grid = (pl.cdiv(B, b_blk), pl.cdiv(HW, t_hw))
    out = pl.pallas_call(
        _sa_kernel_mxu,
        out_shape=jax.ShapeDtypeStruct((B, C, HW), dtype),
        grid_spec=pltpu.PrefetchScalarGridSpec(
            num_scalar_prefetch=0,
            grid=grid,
            in_specs=[
                pl.BlockSpec((b_blk, C, t_hw), lambda bi, si: (bi, 0, si)),
                pl.BlockSpec((1, C), lambda bi, si: (0, 0)),
                pl.BlockSpec((1, 1), lambda bi, si: (0, 0),
                             memory_space=pltpu.MemorySpace.SMEM),
            ],
            out_specs=pl.BlockSpec((b_blk, C, t_hw), lambda bi, si: (bi, 0, si)),
        ),
        compiler_params=params,
        cost_estimate=cost,
    )(x3, w_f32, b_f32)
    return out.reshape(B, C, H, W)


# ------------------------------------------------------------------------- reference


def _reference(x_nchw, weight, bias):
    w = weight.reshape(-1)                                             # (C,)
    pre = jnp.einsum("bchw,c->bhw", x_nchw, w,
                     precision=jax.lax.Precision.HIGHEST) + bias[0]    # (B, H, W)
    att = jax.nn.sigmoid(pre)[:, None, :, :]                           # (B, 1, H, W)
    return x_nchw * att


if __name__ == "__main__":
    key = jax.random.PRNGKey(0)

    # --- primary test: small C -> plane (4-D) path --------------------------------
    kx, kw, kb, key = jax.random.split(key, 4)
    B, C, H, W = 2, 4, 16, 16
    x = jax.random.normal(kx, (B, C, H, W), dtype=jnp.float32)
    weight = jax.random.normal(kw, (1, C, 1, 1), dtype=jnp.float32) * 0.1
    bias = jax.random.normal(kb, (1,), dtype=jnp.float32) * 0.1

    out = jax.block_until_ready(spatial_attention(x, weight, bias))
    ref = _reference(x, weight, bias)
    assert out.shape == (B, C, H, W)
    assert jnp.allclose(out, ref, atol=1e-5, rtol=1e-5), "mismatch vs reference (plane path)"

    # --- secondary test: large C -> MXU path --------------------------------------
    kx2, kw2, kb2, key = jax.random.split(key, 4)
    B2, C2, H2, W2 = 2, 128, 8, 16
    x2 = jax.random.normal(kx2, (B2, C2, H2, W2), dtype=jnp.float32)
    weight2 = jax.random.normal(kw2, (1, C2, 1, 1), dtype=jnp.float32) * 0.1
    bias2 = jax.random.normal(kb2, (1,), dtype=jnp.float32) * 0.1

    out2 = jax.block_until_ready(spatial_attention(x2, weight2, bias2))
    ref2 = _reference(x2, weight2, bias2)
    assert out2.shape == (B2, C2, H2, W2)
    assert jnp.allclose(out2, ref2, atol=5e-3, rtol=5e-3), "mismatch vs reference (MXU path)"

    print("KERNEL_OK")
</pallas_src>

<mosaic_0001>
module attributes {stable_mosaic.version = 11 : i64} {
  func.func @_sa_kernel_planes(%arg0: i32, %arg1: i32, %arg2: memref<1x4x2x128xf32, #tpu.memory_space<vmem>>, %arg3: memref<1x4xf32, #tpu.memory_space<smem>>, %arg4: memref<1x1xf32, #tpu.memory_space<smem>>, %arg5: memref<1x4x2x128xf32, #tpu.memory_space<vmem>>) attributes {dimension_semantics = [#tpu.dimension_semantics<parallel>, #tpu.dimension_semantics<parallel>], iteration_bounds = array<i64: 2, 1>, scalar_prefetch = 0 : i64, scratch_operands = 0 : i64, tpu.core_type = #tpu.core_type<tc>, window_params = [{transform_indices = @transform_0, window_bounds = array<i64: 1, 4, 2, 128>}, {transform_indices = @transform_1, window_bounds = array<i64: 1, 4>}, {transform_indices = @transform_2, window_bounds = array<i64: 1, 1>}, {transform_indices = @transform_3, window_bounds = array<i64: 1, 4, 2, 128>}]} {
    %c0 = arith.constant 0 : index
    %c0_0 = arith.constant 0 : index
    %0 = memref.load %arg4[%c0, %c0_0] : memref<1x1xf32, #tpu.memory_space<smem>>
    %1 = vector.broadcast %0 : f32 to vector<1x2x128xf32>
    %c0_1 = arith.constant 0 : index
    %c0_2 = arith.constant 0 : index
    %c0_3 = arith.constant 0 : index
    %c0_4 = arith.constant 0 : index
    %2 = vector.load %arg2[%c0_1, %c0_2, %c0_3, %c0_4] : memref<1x4x2x128xf32, #tpu.memory_space<vmem>>, vector<1x1x2x128xf32>
    %3 = vector.shape_cast %2 : vector<1x1x2x128xf32> to vector<1x2x128xf32>
    %c0_5 = arith.constant 0 : index
    %c0_6 = arith.constant 0 : index
    %4 = memref.load %arg3[%c0_5, %c0_6] : memref<1x4xf32, #tpu.memory_space<smem>>
    %5 = vector.broadcast %4 : f32 to vector<1x2x128xf32>
    %6 = arith.mulf %3, %5 : vector<1x2x128xf32>
    %7 = arith.addf %1, %6 : vector<1x2x128xf32>
    %c0_7 = arith.constant 0 : index
    %c1 = arith.constant 1 : index
    %c0_8 = arith.constant 0 : index
    %c0_9 = arith.constant 0 : index
    %8 = vector.load %arg2[%c0_7, %c1, %c0_8, %c0_9] : memref<1x4x2x128xf32, #tpu.memory_space<vmem>>, vector<1x1x2x128xf32>
    %9 = vector.shape_cast %8 : vector<1x1x2x128xf32> to vector<1x2x128xf32>
    %c0_10 = arith.constant 0 : index
    %c1_11 = arith.constant 1 : index
    %10 = memref.load %arg3[%c0_10, %c1_11] : memref<1x4xf32, #tpu.memory_space<smem>>
    %11 = vector.broadcast %10 : f32 to vector<1x2x128xf32>
    %12 = arith.mulf %9, %11 : vector<1x2x128xf32>
    %13 = arith.addf %7, %12 : vector<1x2x128xf32>
    %c0_12 = arith.constant 0 : index
    %c2 = arith.constant 2 : index
    %c0_13 = arith.constant 0 : index
    %c0_14 = arith.constant 0 : index
    %14 = vector.load %arg2[%c0_12, %c2, %c0_13, %c0_14] : memref<1x4x2x128xf32, #tpu.memory_space<vmem>>, vector<1x1x2x128xf32>
    %15 = vector.shape_cast %14 : vector<1x1x2x128xf32> to vector<1x2x128xf32>
    %c0_15 = arith.constant 0 : index
    %c2_16 = arith.constant 2 : index
    %16 = memref.load %arg3[%c0_15, %c2_16] : memref<1x4xf32, #tpu.memory_space<smem>>
    %17 = vector.broadcast %16 : f32 to vector<1x2x128xf32>
    %18 = arith.mulf %15, %17 : vector<1x2x128xf32>
    %19 = arith.addf %13, %18 : vector<1x2x128xf32>
    %c0_17 = arith.constant 0 : index
    %c3 = arith.constant 3 : index
    %c0_18 = arith.constant 0 : index
    %c0_19 = arith.constant 0 : index
    %20 = vector.load %arg2[%c0_17, %c3, %c0_18, %c0_19] : memref<1x4x2x128xf32, #tpu.memory_space<vmem>>, vector<1x1x2x128xf32>
    %21 = vector.shape_cast %20 : vector<1x1x2x128xf32> to vector<1x2x128xf32>
    %c0_20 = arith.constant 0 : index
    %c3_21 = arith.constant 3 : index
    %22 = memref.load %arg3[%c0_20, %c3_21] : memref<1x4xf32, #tpu.memory_space<smem>>
    %23 = vector.broadcast %22 : f32 to vector<1x2x128xf32>
    %24 = arith.mulf %21, %23 : vector<1x2x128xf32>
    %25 = arith.addf %19, %24 : vector<1x2x128xf32>
    %26 = arith.negf %25 : vector<1x2x128xf32>
    %27 = math.exp %26 : vector<1x2x128xf32>
    %cst = arith.constant 1.000000e+00 : f32
    %28 = vector.broadcast %cst : f32 to vector<1x2x128xf32>
    %29 = arith.addf %28, %27 : vector<1x2x128xf32>
    %30 = arith.divf %28, %29 : vector<1x2x128xf32>
    %c0_22 = arith.constant 0 : index
    %c0_23 = arith.constant 0 : index
    %c0_24 = arith.constant 0 : index
    %c0_25 = arith.constant 0 : index
    %31 = vector.load %arg2[%c0_22, %c0_23, %c0_24, %c0_25] : memref<1x4x2x128xf32, #tpu.memory_space<vmem>>, vector<1x1x2x128xf32>
    %32 = vector.shape_cast %31 : vector<1x1x2x128xf32> to vector<1x2x128xf32>
    %33 = arith.mulf %32, %30 : vector<1x2x128xf32>
    %c0_26 = arith.constant 0 : index
    %c0_27 = arith.constant 0 : index
    %c0_28 = arith.constant 0 : index
    %c0_29 = arith.constant 0 : index
    %34 = vector.load %arg5[%c0_26, %c0_27, %c0_28, %c0_29] : memref<1x4x2x128xf32, #tpu.memory_space<vmem>>, vector<1x1x2x128xf32>
    %35 = vector.shape_cast %34 : vector<1x1x2x128xf32> to vector<1x2x128xf32>
    %36 = vector.shape_cast %33 : vector<1x2x128xf32> to vector<1x1x2x128xf32>
    tpu.vector_store %arg5[%c0_26, %c0_27, %c0_28, %c0_29], %36 {strides = array<i32>} : memref<1x4x2x128xf32, #tpu.memory_space<vmem>>, vector<1x1x2x128xf32>,
    %c0_30 = arith.constant 0 : index
    %c1_31 = arith.constant 1 : index
    %c0_32 = arith.constant 0 : index
    %c0_33 = arith.constant 0 : index
    %37 = vector.load %arg2[%c0_30, %c1_31, %c0_32, %c0_33] : memref<1x4x2x128xf32, #tpu.memory_space<vmem>>, vector<1x1x2x128xf32>
    %38 = vector.shape_cast %37 : vector<1x1x2x128xf32> to vector<1x2x128xf32>
    %39 = arith.mulf %38, %30 : vector<1x2x128xf32>
    %c0_34 = arith.constant 0 : index
    %c1_35 = arith.constant 1 : index
    %c0_36 = arith.constant 0 : index
    %c0_37 = arith.constant 0 : index
    %40 = vector.load %arg5[%c0_34, %c1_35, %c0_36, %c0_37] : memref<1x4x2x128xf32, #tpu.memory_space<vmem>>, vector<1x1x2x128xf32>
    %41 = vector.shape_cast %40 : vector<1x1x2x128xf32> to vector<1x2x128xf32>
    %42 = vector.shape_cast %39 : vector<1x2x128xf32> to vector<1x1x2x128xf32>
    tpu.vector_store %arg5[%c0_34, %c1_35, %c0_36, %c0_37], %42 {strides = array<i32>} : memref<1x4x2x128xf32, #tpu.memory_space<vmem>>, vector<1x1x2x128xf32>,
    %c0_38 = arith.constant 0 : index
    %c2_39 = arith.constant 2 : index
    %c0_40 = arith.constant 0 : index
    %c0_41 = arith.constant 0 : index
    %43 = vector.load %arg2[%c0_38, %c2_39, %c0_40, %c0_41] : memref<1x4x2x128xf32, #tpu.memory_space<vmem>>, vector<1x1x2x128xf32>
    %44 = vector.shape_cast %43 : vector<1x1x2x128xf32> to vector<1x2x128xf32>
    %45 = arith.mulf %44, %30 : vector<1x2x128xf32>
    %c0_42 = arith.constant 0 : index
    %c2_43 = arith.constant 2 : index
    %c0_44 = arith.constant 0 : index
    %c0_45 = arith.constant 0 : index
    %46 = vector.load %arg5[%c0_42, %c2_43, %c0_44, %c0_45] : memref<1x4x2x128xf32, #tpu.memory_space<vmem>>, vector<1x1x2x128xf32>
    %47 = vector.shape_cast %46 : vector<1x1x2x128xf32> to vector<1x2x128xf32>
    %48 = vector.shape_cast %45 : vector<1x2x128xf32> to vector<1x1x2x128xf32>
    tpu.vector_store %arg5[%c0_42, %c2_43, %c0_44, %c0_45], %48 {strides = array<i32>} : memref<1x4x2x128xf32, #tpu.memory_space<vmem>>, vector<1x1x2x128xf32>,
    %c0_46 = arith.constant 0 : index
    %c3_47 = arith.constant 3 : index
    %c0_48 = arith.constant 0 : index
    %c0_49 = arith.constant 0 : index
    %49 = vector.load %arg2[%c0_46, %c3_47, %c0_48, %c0_49] : memref<1x4x2x128xf32, #tpu.memory_space<vmem>>, vector<1x1x2x128xf32>
    %50 = vector.shape_cast %49 : vector<1x1x2x128xf32> to vector<1x2x128xf32>
    %51 = arith.mulf %50, %30 : vector<1x2x128xf32>
    %c0_50 = arith.constant 0 : index
    %c3_51 = arith.constant 3 : index
    %c0_52 = arith.constant 0 : index
    %c0_53 = arith.constant 0 : index
    %52 = vector.load %arg5[%c0_50, %c3_51, %c0_52, %c0_53] : memref<1x4x2x128xf32, #tpu.memory_space<vmem>>, vector<1x1x2x128xf32>
    %53 = vector.shape_cast %52 : vector<1x1x2x128xf32> to vector<1x2x128xf32>
    %54 = vector.shape_cast %51 : vector<1x2x128xf32> to vector<1x1x2x128xf32>
    tpu.vector_store %arg5[%c0_50, %c3_51, %c0_52, %c0_53], %54 {strides = array<i32>} : memref<1x4x2x128xf32, #tpu.memory_space<vmem>>, vector<1x1x2x128xf32>,
    return
  }
  func.func @transform_0(%arg0: i32, %arg1: i32) -> (i32, i32, i32, i32) {
    %c0_i32 = arith.constant 0 : i32
    %c0_i32_0 = arith.constant 0 : i32
    %c0_i32_1 = arith.constant 0 : i32
    return %arg0, %c0_i32, %arg1, %c0_i32_0 : i32, i32, i32, i32
  }
  func.func @transform_1(%arg0: i32, %arg1: i32) -> (i32, i32) {
    %c0_i32 = arith.constant 0 : i32
    %c0_i32_0 = arith.constant 0 : i32
    %c0_i32_1 = arith.constant 0 : i32
    return %c0_i32, %c0_i32_0 : i32, i32
  }
  func.func @transform_2(%arg0: i32, %arg1: i32) -> (i32, i32) {
    %c0_i32 = arith.constant 0 : i32
    %c0_i32_0 = arith.constant 0 : i32
    %c0_i32_1 = arith.constant 0 : i32
    return %c0_i32, %c0_i32_0 : i32, i32
  }
  func.func @transform_3(%arg0: i32, %arg1: i32) -> (i32, i32, i32, i32) {
    %c0_i32 = arith.constant 0 : i32
    %c0_i32_0 = arith.constant 0 : i32
    %c0_i32_1 = arith.constant 0 : i32
    return %arg0, %c0_i32, %arg1, %c0_i32_0 : i32, i32, i32, i32
  }
}

</mosaic_0001>

<bundles_post_ra>
// kernel: tpu_custom_call.1
= control target key start
LH: loop header
LB: loop body
LE: loop exit
PB: predicated region body
PF: predicated region fallthrough
CT: control target
= control target key end

     0   :  { %s879_s0 = inlined_call_operand.hbm [shape: f32[2,4,2,128], index: 0, kind: input, shape index: {}]   ;;  %s880_s1 = inlined_call_operand.vmem [shape: f32[1,4], index: 1, kind: input, shape index: {}]   ;;  %s881_s2 = inlined_call_operand.<no memory space> [shape: f32[1,1], index: 2, kind: input, shape index: {}]   ;;  %s882_s3 = inlined_call_operand.hbm [shape: f32[2,4,2,128], index: 3, kind: output, shape index: {}]  }
   0x1   :  { %8 = sst [smem:[#allocation2]] %s881_s2 }
   0x2   :  { %9 = vsyncpa [#allocation4], 0 }
   0x3   :  { %11 = vsyncpa [#allocation4 + $0x1], 0 }
   0x4   :  { %12 = vsyncpa [#allocation6], 0 }
   0x5   :  { %13 = vsyncpa [#allocation5], 0 }
   0x6   :  { %15 = vsyncpa [#allocation5 + $0x1], 0  ;;  %s654_s14 = smov 0   ;;  %s656_s15 = smov 0  }
   0x7   :  { %s658_s16 = smov 0   ;;  %s660_s17 = smov 0  }
   0x8   :  { %s662_s18 = smov 0   ;;  %s664_s19 = smov 0  }
   0x9 LB: > { %s378_s2 = sadd.s32 4294967295, %s622_s19   ;;  %s379_s20 = sadd.s32 4294967294, %s622_s19   ;;  %s622_s19 = sphi %s664_s19, %s21_s19   ;;  %s618_s18 = sphi %s662_s18, %s905_s18   ;;  %s614_s17 = sphi %s660_s17, %s904_s17   ;;  %s610_s16 = sphi %s658_s16, %s903_s16   ;;  %s606_s15 = sphi %s656_s15, %s902_s15   ;;  %s602_s14 = sphi %s654_s14, %s901_s14  }
   0xa   : > { %s42_s21 = sadd.s32 1, %s610_s16  ;;  %p49_p0 = scmp.ne.s32.totalorder %s610_s16, %s606_s15 }
   0xb   : > { %p50_p1 = scmp.eq.s32.totalorder %s622_s19, 0  ;;  %p55_p2 = scmp.ne.s32.totalorder %s606_s15, %s602_s14 }
   0xc   : > { %p692_p3 = scmp.eq.s32.totalorder %s378_s2, 0  ;;  %p123_p4 = scmp.eq.s32.totalorder %s378_s2, 1 }
   0xd   : > { %p696_p5 = por %p50_p1, %p49_p0  ;;  %p129_p6 = scmp.eq.s32.totalorder %s379_s20, 1 }
   0xe   : > { %s887_s22 = scalar_select %p692_p3, 1, 0 }
   0xf   : > { %p702_p7 = por %p692_p3, %p55_p2  ;;  %p706_p8 = por %p123_p4, %p49_p0 }
  0x10   : > { %p710_p9 = por %p129_p6, %p55_p2  ;;  %p380_p10 = scmp.ge.s32.totalorder %s622_s19, 1 }
  0x11   : > { %s889_s24 = scalar_select %p702_p7, 1, 0 }
  0x12   : > { %s890_s25 = scalar_select %p706_p8, 1, 0 }
  0x13   : > { %s891_s26 = scalar_select %p710_p9, 1, 0 }
  0x14   : > { %p136_p11 = scmp.lt.s32.totalorder %s622_s19, 3  ;;  %s149_s29 = sshll.u32 %s880_s1, 4  ;;  %s150_s29 = int_to_ptr.vmem [resolvable:$true] %s149_s29 }
  0x15   : > { %p431_p0 = scmp.lt.s32.totalorder %s622_s19, 2  ;;  %s33_s6 = sadd.s32 1, %s618_s18 }
  0x16   : > { %p719_p12 = pnand %p380_p10, %p136_p11  ;;  %p740_p6 = scmp.ge.s32.totalorder %s33_s6, 2 }
  0x17   : > { %p729_p2 = pnand %p431_p0, %p696_p5  ;;  %s163_s8 = sand.u32 1, %s610_s16  }
  0x18   : > { %p418_p1 = pneg %p719_p12  ;;  %s491_s9 = scalar_lea.vmem %s150_s29, 16 }
  0x19   : > { %p492_p10 = scmp.ne.s32.totalorder %s150_s29, %s491_s9  ;;  %p499_p13 = scmp.lt.s32.totalorder %s150_s29, %s150_s29 }
  0x1a   : > { %p735_p4 = pnand %p418_p1, %p692_p3  ;;  %p500_p9 = scmp.lt.s32.totalorder %s491_s9, %s491_s9 }
  0x1c   : > { %p493_p11 = pneg %p735_p4  ;;  %p501_p8 = por %p500_p9, %p499_p13 }
  0x1e   : > { %p494_p5 = pnand %p493_p11, %p492_p10 }
  0x20   : > { %p495_p0 = pneg %p494_p5 }
  0x22   : > { %p502_p1 = pnand %p501_p8, %p495_p0 }
  0x24   : > { %505 = shalt.err (!%p502_p1)
}
  0x25   : > { %s624_s10 = smov [#allocation7]   ;;  %s907_s6 = smov (%p740_p6, %s33_s6), 0 }
  0x26   : > { %421 = dma.vmem_to_smem (!%p735_p4), %s150_s29, 16, %s624_s10, [#allocation6]  }
  0x27   : > { %s383_s11 = sshll.u32 %s163_s8, 3  ;;  %s37_s12 = ssub.s32 %s618_s18, %s907_s6 }
  0x28   : > { %p40_p9 = scmp.eq.s32.totalorder %s37_s12, 0  ;;  %s408_s13 = sshll.u32 %s618_s18, 7 }
  0x29   : > { %s759_s23 = scalar_lea.hbm %s879_s0, %s408_s13  ;;  %s167_s27 = scalar_lea.vmem [#allocation3], %s383_s11 }
  0x2a   : > { %s175_s28 = sshll.u32 %s167_s27, 4  ;;  %s768_s5 = scalar_lea.sflag [#allocation4], %s163_s8  ;;  %s766_s28 = int_to_ptr.vmem [resolvable:$true] %s175_s28 }
  0x2b   : > { %s764_s29 = scalar_select %p40_p9, %s610_s16, %s42_s21  }
  0x2c   : > { %s506_s7 = scalar_lea.hbm %s759_s23, 128  ;;  %p508_p13 = pneg %p729_p2 }
  0x2d   : > { %p507_p8 = scmp.ne.s32.totalorder %s759_s23, %s506_s7  ;;  %s511_s11 = scalar_lea.hbm %s879_s0, 256 }
  0x2e   : > { %p512_p10 = scmp.lt.u32.totalorder %s759_s23, %s879_s0  ;;  %p513_p11 = scmp.lt.u32.totalorder %s511_s11, %s506_s7 }
  0x2f   : > { %p509_p4 = pnand %p508_p13, %p507_p8  ;;  %p515_p0 = scmp.lt.u32.totalorder %s506_s7, %s759_s23 }
  0x30   : > { %p514_p5 = por %p513_p11, %p512_p10 }
  0x31   : > { %p510_p6 = pneg %p509_p4 }
  0x32   : > { %p516_p1 = por %p515_p0, %p514_p5 }
  0x34   : > { %p517_p9 = pnand %p516_p1, %p510_p6 }
  0x36   : > { %520 = shalt.err (!%p517_p9)
}
  0x37   : > { %s521_s21 = scalar_lea.vmem %s766_s28, 128  ;;  %s625_s8 = smov [#allocation3]  }
  0x38   : > { %p522_p8 = scmp.ne.s32.totalorder %s766_s28, %s521_s21  ;;  %s526_s2 = sshll.u32 %s625_s8, 4  ;;  %s527_s2 = int_to_ptr.vmem [resolvable:$false] %s526_s2 }
  0x39   : > { %s528_s20 = scalar_lea.vmem %s527_s2, 256  ;;  %p529_p7 = scmp.lt.s32.totalorder %s766_s28, %s527_s2 }
  0x3a   : > { %p524_p4 = pnand %p522_p8, %p508_p13  ;;  %p530_p10 = scmp.lt.s32.totalorder %s528_s20, %s521_s21 }
  0x3c   : > { %p525_p3 = pneg %p524_p4  ;;  %p531_p11 = por %p530_p10, %p529_p7 }
  0x3e   : > { %p532_p5 = pnand %p531_p11, %p525_p3 }
  0x40   : > { %535 = shalt.err (!%p532_p5)
}
  0x41   : > { %s626_s27 = smov 32   ;;  %s627_s7 = smov 2  }
  0x42   : > { %425 = dma.hbm_to_vmem [thread:$0]  (!%p729_p2), %s759_s23, 128, %s766_s28, %s768_s5, %s626_s27, %s626_s27, %s627_s7  }
  0x43   : > { %187 = sbr.rel (%p719_p12) target bundleno = 142 (0x8e), region = 32  ;;  %s799_s9 = sand.u32 (!%p719_p12), 1, %s606_s15  }
  0x44   : > { %s387_s10 = sshll.u32 (!%p719_p12), %s799_s9, 3  ;;  %s190_s11 = scalar_lea.sflag (!%p719_p12), [#allocation4], %s799_s9 }
  0x45   : > { %s805_s12 = scalar_lea.vmem (!%p719_p12), [#allocation3], %s387_s10  ;;  %p896_p3 = scmp.ne.s32.totalorder (!%p719_p12), %s889_s24, 0 }
  0x4a   : > { %589 = dma.done.wait (%p896_p3), %s190_s11, 128  }
  0x4b   : > { %591 = vsyncadd (%p896_p3), %s190_s11, 4294967168  ;;  %p897_p7 = scmp.ne.s32.totalorder %s887_s22, 0 }
  0x4d   : > { %593 = dma.done.wait (%p897_p7), [#allocation6], 16  }
  0x4e   : > { %595 = vsyncadd (%p897_p7), [#allocation6], 4294967280 }
  0x4f   : > { %202 = sfence }
  0x50   : > { %s221_s30 = sld [smem:[#allocation2]]  ;;  %s391_s23 = sld [smem:[#allocation7 + $0x1]]  ;;  %v223_v0 = vld [vmem:[%s805_s12] sm:$0x3]  ;;  %v390_v1 = vld [vmem:[%s805_s12 + $0x2] sm:$0x3] }
  0x51   : > { %s224_s4 = sld [smem:[#allocation7]]  ;;  %s393_s28 = sld [smem:[#allocation7 + $0x2]]  ;;  %v392_v5 = vld [vmem:[%s805_s12 + $0x4] sm:$0x3]  ;;  %v394_v9 = vld [vmem:[%s805_s12 + $0x6] sm:$0x3] }
  0x52   : > { %s395_s5 = sld [smem:[#allocation7 + $0x3]]  ;;  %s220_s22 = scalar_lea.vmem [#allocation8], %s387_s10  ;;  %v397_v20 = vld [vmem:[%s805_s12 + $0x2] sm:$0x3]  ;;  %v399_v21 = vld [vmem:[%s805_s12 + $0x4] sm:$0x3] }
  0x53   : > { %s281_s24 = sshll.u32 %s220_s22, 4  ;;  %v401_v22 = vld [vmem:[%s805_s12 + $0x6] sm:$0x3]  ;;  %s409_s13 = sshll.u32 %s614_s17, 7  ;;  %s825_s24 = int_to_ptr.vmem [resolvable:$true] %s281_s24 }
  0x54   : > { %s830_s2 = scalar_lea.hbm %s882_s3, %s409_s13  ;;  %s267_s17 = scalar_lea.sflag [#allocation5], %s799_s9 }
  0x55   : > { %s536_s20 = scalar_lea.vmem %s825_s24, 128  ;;  %p898_p2 = scmp.ne.s32.totalorder %s890_s25, 0 }
  0x56   : > { %v222_v2 = vstv %s221_s30  ;;  %v231_v4 = vstv %s391_s23  ;;  %p537_p12 = scmp.ne.s32.totalorder %s825_s24, %s536_s20  ;;  %s628_s27 = smov [#allocation8]  }
  0x57   : > { %v225_v3 = vstv %s224_s4  ;;  %v232_v7 = vmul.f32 %v390_v1, %v231_v4  ;;  %v237_v8 = vstv %s393_s28  ;;  %s540_s7 = sshll.u32 %s628_s27, 4  ;;  %s541_s7 = int_to_ptr.vmem [resolvable:$false] %s540_s7 }
  0x58   : > { %v226_v6 = vmul.f32 %v225_v3, %v223_v0  ;;  %v243_v10 = vstv %s395_s5  ;;  %v238_v12 = vmul.f32 %v392_v5, %v237_v8  ;;  %p538_p13 = pnand %p537_p12, %p898_p2  ;;  %s542_s10 = scalar_lea.vmem %s541_s7, 256 }
  0x59   : > { %v244_v14 = vmul.f32 %v394_v9, %v243_v10  ;;  %p543_p0 = scmp.lt.s32.totalorder %s825_s24, %s541_s7  ;;  %p544_p1 = scmp.lt.s32.totalorder %s542_s10, %s536_s20 }
  0x5a   : > { %v227_v11 = vadd.f32 %v226_v6, %v222_v2  ;;  %p539_p6 = pneg %p538_p13 }
  0x5b   : > { %p545_p9 = por %p544_p1, %p543_p0 }
  0x5c   : > { %v233_v13 = vadd.f32 %v232_v7, %v227_v11 }
  0x5d   : > { %p546_p8 = pnand %p545_p9, %p539_p6 }
  0x5e   : > { %v239_v15 = vadd.f32 %v238_v12, %v233_v13 }
  0x60   : > { %v245_v16 = vadd.f32 %v244_v14, %v239_v15 }
  0x62   : > { %v396_v17 = vmul.f32 -1.442695, %v245_v16 }
  0x64   : > { %487 = vpow2.f32 %v396_v17 }
  0x6e   : > { %v488_v18 = vpop.eup %487 }
  0x6f   : > { %v249_v19 = vadd.f32 1.0, %v488_v18 }
  0x71   : > { %489 = vrcp.f32 %v249_v19 }
  0x7b   : > { %v490_v23 = vpop.eup %489 }
  0x7c   : > { %v252_v24 = vmul.f32 %v490_v23, %v223_v0  ;;  %v255_v25 = vmul.f32 %v490_v23, %v397_v20  ;;  %v259_v26 = vmul.f32 %v490_v23, %v399_v21  ;;  %v263_v27 = vmul.f32 %v490_v23, %v401_v22 }
  0x7e   : > { %253 = vst [vmem:[%s220_s22] sm:$0x3] %v252_v24  ;;  %398 = vst [vmem:[%s220_s22 + $0x2] sm:$0x3] %v255_v25 }
  0x7f   : > { %400 = vst [vmem:[%s220_s22 + $0x4] sm:$0x3] %v259_v26  ;;  %402 = vst [vmem:[%s220_s22 + $0x6] sm:$0x3] %v263_v27 }
  0x80   : > { %549 = shalt.err (!%p546_p8)
}
  0x81   : > { %s550_s11 = scalar_lea.hbm %s830_s2, 128  ;;  %s554_s4 = scalar_lea.hbm %s882_s3, 256 }
  0x82   : > { %p551_p4 = scmp.ne.s32.totalorder %s830_s2, %s550_s11  ;;  %p555_p5 = scmp.lt.u32.totalorder %s830_s2, %s882_s3 }
  0x83   : > { %p556_p3 = scmp.lt.u32.totalorder %s554_s4, %s550_s11  ;;  %p558_p12 = scmp.lt.u32.totalorder %s550_s11, %s830_s2 }
  0x84   : > { %p552_p10 = pnand %p551_p4, %p898_p2 }
  0x85   : > { %p557_p7 = por %p556_p3, %p555_p5 }
  0x86   : > { %p553_p11 = pneg %p552_p10 }
  0x87   : > { %p559_p13 = por %p558_p12, %p557_p7 }
  0x89   : > { %p560_p6 = pnand %p559_p13, %p553_p11 }
  0x8b   : > { %563 = shalt.err (!%p560_p6)
}
  0x8c   : > { %s629_s5 = smov 32   ;;  %s630_s22 = smov 2  }
  0x8d   : > { %416 = dma.vmem_to_hbm [thread:$0]  (%p898_p2), %s825_s24, 128, %s830_s2, %s267_s17, %s629_s5, %s629_s5, %s630_s22  }
  0x8e PF: > { %s296_s13 = sand.u32 1, %s602_s14   ;;  %p899_p0 = scmp.ne.s32.totalorder %s891_s26, 0 }
  0x8f   : > { %p900_p1 = scmp.ge.s32.totalorder %s622_s19, 2  ;;  %s297_s21 = scalar_lea.sflag [#allocation5], %s296_s13 }
  0x91   : > { %p427_p9 = pnand %p900_p1, %p899_p0 }
  0x93   : > { %597 = dma.done.wait (!%p427_p9), %s297_s21, 128  }
  0x94   : > { %599 = vsyncadd (!%p427_p9), %s297_s21, 4294967168  ;;  %s21_s19 = sadd.s32 1, %s622_s19   ;;  %s901_s14 = smov %s606_s15 }
  0x95   : > { %p18_p8 = scmp.ge.s32.totalorder %s21_s19, 4   ;;  %s902_s15 = smov %s610_s16 }
  0x96   : > { %s903_s16 = smov %s764_s29  ;;  %s904_s17 = smov %s618_s18 }
  0x97   : > { %s905_s18 = smov %s907_s6  ;;  %20 = sbr.rel (!%p18_p8) target bundleno = 9 (0x9), region = 88 }
  0x9e   :  { %302 = vsyncpa [#allocation4], 1 }
  0x9f   :  { %304 = vsyncpa [#allocation4 + $0x1], 1 }
  0xa0   :  { %305 = vsyncpa [#allocation5], 1 }
  0xa1   :  { %307 = vsyncpa [#allocation5 + $0x1], 1 }
  0xa2   :  { %308 = vsyncpa [#allocation6], 1 }
  0xa3   :  { %310 = vsyncpa [#allocation6 + $0x1], 1 }

</bundles_post_ra>
